<compile_context>
chip_gen: v5e
topology: v5e:2x2
jax: 0.10.0
libtpu: 0.0.40
codegen_flags: <defaults>
</compile_context>

<pallas_src>
import functools

import jax
import jax.numpy as jnp
from jax.experimental import pallas as pl
from jax.experimental.pallas import tpu as pltpu


def _label_smoothing_kernel(pred_ref, tgt_ref, out_ref, *,
                            smooth_val, confidence, inv_n):
    # Scalar accumulator lives in SMEM; init on the first grid step.
    @pl.when(pl.program_id(0) == 0)
    def _init():
        out_ref[0, 0] = jnp.float32(0.0)

    logits = pred_ref[...].astype(jnp.float32)                # (TN, C)

    # Numerically stable log_softmax along the class (lane) axis.
    m = jnp.max(logits, axis=-1, keepdims=True)               # (TN, 1)
    shifted = logits - m
    lse = jnp.log(jnp.sum(jnp.exp(shifted), axis=-1, keepdims=True))
    logp = shifted - lse                                       # (TN, C)

    # One-hot selection of the target class via lane-iota compare.
    tgt = tgt_ref[...]                                         # (TN, 1) int32
    col = jax.lax.broadcasted_iota(jnp.int32, logp.shape, 1)   # (TN, C)
    onehot = col == tgt                                        # (TN, C) bool

    sum_logp = jnp.sum(logp, axis=-1, keepdims=True)           # (TN, 1)
    tgt_logp = jnp.sum(jnp.where(onehot, logp, 0.0),
                       axis=-1, keepdims=True)                 # (TN, 1)

    # -(smooth*(sum - tgt) + conf*tgt) == -(smooth*sum + (conf-smooth)*tgt)
    row_loss = -(smooth_val * sum_logp + (confidence - smooth_val) * tgt_logp)

    # Accumulate the (already /N scaled) partial mean.
    out_ref[0, 0] += jnp.sum(row_loss) * inv_n


def label_smoothing_loss(pred, target, *, classes, smoothing=0.0, row_tile=None):
    """pred: (N, C) float, target: (N,) int -> scalar float32 loss."""
    N, C = pred.shape
    assert C == classes
    confidence = 1.0 - smoothing
    smooth_val = smoothing / (classes - 1)

    if row_tile is None:
        # Largest convenient row tile that divides N (keeps VMEM use bounded
        # for big N, degenerates to a single grid step for small N).
        row_tile = N
        for cand in (512, 256, 128):
            if N % cand == 0:
                row_tile = cand
                break
    assert N % row_tile == 0
    grid = (N // row_tile,)

    tgt2d = target.astype(jnp.int32).reshape(N, 1)

    kernel = functools.partial(
        _label_smoothing_kernel,
        # Plain Python floats -> static constants, no captured JAX arrays.
        smooth_val=float(smooth_val),
        confidence=float(confidence),
        inv_n=float(1.0 / N),
    )

    out = pl.pallas_call(
        kernel,
        out_shape=jax.ShapeDtypeStruct((1, 1), jnp.float32),
        grid_spec=pltpu.PrefetchScalarGridSpec(
            num_scalar_prefetch=0,
            grid=grid,
            in_specs=[
                pl.BlockSpec((row_tile, C), lambda i: (i, 0)),
                pl.BlockSpec((row_tile, 1), lambda i: (i, 0)),
            ],
            out_specs=pl.BlockSpec(
                (1, 1), lambda i: (0, 0),
                memory_space=pltpu.MemorySpace.SMEM),
        ),
        compiler_params=pltpu.CompilerParams(
            dimension_semantics=("arbitrary",)),
    )(pred, tgt2d)
    return out[0, 0]


def _reference(pred, target, classes, smoothing):
    logp = jax.nn.log_softmax(pred.astype(jnp.float32), axis=-1)
    true_dist = jnp.full_like(logp, smoothing / (classes - 1))
    true_dist = true_dist.at[jnp.arange(pred.shape[0]), target].set(1.0 - smoothing)
    return jnp.mean(jnp.sum(-true_dist * logp, axis=-1))


if __name__ == "__main__":
    N, C = 8, 32
    smoothing = 0.1

    key = jax.random.PRNGKey(0)
    k_pred, k_tgt = jax.random.split(key)
    pred = jax.random.normal(k_pred, (N, C), dtype=jnp.float32)
    target = jax.random.randint(k_tgt, (N,), 0, C, dtype=jnp.int32)

    loss = label_smoothing_loss(pred, target, classes=C, smoothing=smoothing)
    loss = jax.block_until_ready(loss)

    ref = _reference(pred, target, C, smoothing)
    assert jnp.allclose(loss, ref, atol=1e-5, rtol=1e-5), (loss, ref)

    print("KERNEL_OK")
</pallas_src>

<mosaic_0001>
module attributes {stable_mosaic.version = 11 : i64} {
  func.func @_label_smoothing_kernel(%arg0: i32, %arg1: memref<8x32xf32, #tpu.memory_space<vmem>>, %arg2: memref<8x1xi32, #tpu.memory_space<vmem>>, %arg3: memref<1x1xf32, #tpu.memory_space<smem>>) attributes {dimension_semantics = [#tpu.dimension_semantics<arbitrary>], iteration_bounds = array<i64: 1>, scalar_prefetch = 0 : i64, scratch_operands = 0 : i64, tpu.core_type = #tpu.core_type<tc>, window_params = [{transform_indices = @transform_0, window_bounds = array<i64: 8, 32>}, {transform_indices = @transform_1, window_bounds = array<i64: 8, 1>}, {transform_indices = @transform_2, window_bounds = array<i64: 1, 1>}]} {
    %c0_i32 = arith.constant 0 : i32
    %0 = arith.cmpi eq, %arg0, %c0_i32 : i32
    %1 = arith.extui %0 : i1 to i32
    %c0_i32_0 = arith.constant 0 : i32
    %2 = arith.cmpi ne, %1, %c0_i32_0 : i32
    scf.if %2 {
      %cst_17 = arith.constant 0.000000e+00 : f32
      %c0_18 = arith.constant 0 : index
      %c0_19 = arith.constant 0 : index
      %39 = memref.load %arg3[%c0_18, %c0_19] : memref<1x1xf32, #tpu.memory_space<smem>>
      memref.store %cst_17, %arg3[%c0_18, %c0_19] : memref<1x1xf32, #tpu.memory_space<smem>>
    } else {
    }
    %c0 = arith.constant 0 : index
    %c0_1 = arith.constant 0 : index
    %3 = vector.load %arg1[%c0, %c0_1] : memref<8x32xf32, #tpu.memory_space<vmem>>, vector<8x32xf32>
    %cst = arith.constant dense<0xFF800000> : vector<8xf32>
    %4 = vector.multi_reduction <maximumf>, %3, %cst [1] : vector<8x32xf32> to vector<8xf32>
    %5 = vector.shape_cast %4 : vector<8xf32> to vector<8x1xf32>
    %6 = vector.broadcast %5 : vector<8x1xf32> to vector<8x32xf32>
    %7 = arith.subf %3, %6 : vector<8x32xf32>
    %8 = math.exp %7 : vector<8x32xf32>
    %cst_2 = arith.constant dense<0.000000e+00> : vector<8xf32>
    %9 = vector.multi_reduction <add>, %8, %cst_2 [1] : vector<8x32xf32> to vector<8xf32>
    %10 = vector.shape_cast %9 : vector<8xf32> to vector<8x1xf32>
    %11 = math.log %10 : vector<8x1xf32>
    %12 = vector.broadcast %11 : vector<8x1xf32> to vector<8x32xf32>
    %13 = arith.subf %7, %12 : vector<8x32xf32>
    %c0_3 = arith.constant 0 : index
    %c0_4 = arith.constant 0 : index
    %14 = vector.load %arg2[%c0_3, %c0_4] : memref<8x1xi32, #tpu.memory_space<vmem>>, vector<8x1xi32>
    %15 = tpu.iota {dimensions = array<i32: 1>} : vector<8x32xi32>
    %16 = vector.broadcast %14 : vector<8x1xi32> to vector<8x32xi32>
    %17 = arith.cmpi eq, %15, %16 : vector<8x32xi32>
    %cst_5 = arith.constant dense<0.000000e+00> : vector<8xf32>
    %18 = vector.multi_reduction <add>, %13, %cst_5 [1] : vector<8x32xf32> to vector<8xf32>
    %19 = vector.shape_cast %18 : vector<8xf32> to vector<8x1xf32>
    %cst_6 = arith.constant 0.000000e+00 : f32
    %20 = vector.broadcast %cst_6 : f32 to vector<8x32xf32>
    %21 = arith.select %17, %13, %20 : vector<8x32xi1>, vector<8x32xf32>
    %cst_7 = arith.constant dense<0.000000e+00> : vector<8xf32>
    %22 = vector.multi_reduction <add>, %21, %cst_7 [1] : vector<8x32xf32> to vector<8xf32>
    %23 = vector.shape_cast %22 : vector<8xf32> to vector<8x1xf32>
    %cst_8 = arith.constant 0.0032258064 : f32
    %24 = vector.broadcast %cst_8 : f32 to vector<8x1xf32>
    %25 = arith.mulf %24, %19 : vector<8x1xf32>
    %cst_9 = arith.constant 0.896774172 : f32
    %26 = vector.broadcast %cst_9 : f32 to vector<8x1xf32>
    %27 = arith.mulf %26, %23 : vector<8x1xf32>
    %28 = arith.addf %25, %27 : vector<8x1xf32>
    %cst_10 = arith.constant 0.000000e+00 : f32
    %29 = vector.broadcast %cst_10 : f32 to vector<8x1xf32>
    %30 = arith.subf %29, %28 : vector<8x1xf32>
    %c0_11 = arith.constant 0 : index
    %c0_12 = arith.constant 0 : index
    %31 = memref.load %arg3[%c0_11, %c0_12] : memref<1x1xf32, #tpu.memory_space<smem>>
    %32 = vector.shape_cast %30 : vector<8x1xf32> to vector<1x8x1xf32>
    %cst_13 = arith.constant dense<0.000000e+00> : vector<1xf32>
    %33 = vector.multi_reduction <add>, %32, %cst_13 [1, 2] : vector<1x8x1xf32> to vector<1xf32>
    %34 = vector.shape_cast %33 : vector<1xf32> to vector<1x1x1xf32>
    %35 = vector.extract %34[0, 0, 0] : f32 from vector<1x1x1xf32>
    %cst_14 = arith.constant 1.250000e-01 : f32
    %36 = arith.mulf %35, %cst_14 : f32
    %37 = arith.addf %31, %36 : f32
    %c0_15 = arith.constant 0 : index
    %c0_16 = arith.constant 0 : index
    %38 = memref.load %arg3[%c0_15, %c0_16] : memref<1x1xf32, #tpu.memory_space<smem>>
    memref.store %37, %arg3[%c0_15, %c0_16] : memref<1x1xf32, #tpu.memory_space<smem>>
    return
  }
  func.func @transform_0(%arg0: i32) -> (i32, i32) {
    %c0_i32 = arith.constant 0 : i32
    %c0_i32_0 = arith.constant 0 : i32
    return %arg0, %c0_i32 : i32, i32
  }
  func.func @transform_1(%arg0: i32) -> (i32, i32) {
    %c0_i32 = arith.constant 0 : i32
    %c0_i32_0 = arith.constant 0 : i32
    return %arg0, %c0_i32 : i32, i32
  }
  func.func @transform_2(%arg0: i32) -> (i32, i32) {
    %c0_i32 = arith.constant 0 : i32
    %c0_i32_0 = arith.constant 0 : i32
    %c0_i32_1 = arith.constant 0 : i32
    return %c0_i32, %c0_i32_0 : i32, i32
  }
}

</mosaic_0001>

<bundles_post_ra>
// kernel: tpu_custom_call.1
= control target key start
LH: loop header
LB: loop body
LE: loop exit
PB: predicated region body
PF: predicated region fallthrough
CT: control target
= control target key end

     0   :  { %vm19_vm0 = vcmask 261120   ;;  %s136_s0 = inlined_call_operand.vmem [shape: f32[8,32], index: 0, kind: input, shape index: {}]   ;;  %s137_s1 = inlined_call_operand.vmem [shape: s32[8,1], index: 1, kind: input, shape index: {}]   ;;  %s138_s2 = inlined_call_operand.hbm [shape: f32[1,1], index: 2, kind: output, shape index: {}]  }
   0x1   :  { %v18_v0 = vld [vmem:[%s136_s0] sm:$0xff] }
   0x2   :  { %7 = vsyncpa [#allocation3], 0  ;;  %v20_v1 = vsel %vm19_vm0, %v18_v0, -inf  ;;  %v32_v2 = vld [vmem:[%s137_s1] sm:$0xff]  ;;  %v106_v3 = vmov 0   ;;  %v33_v10 = vlaneseq  ;;  %vm51_vm2 = vcmask 7168  }
   0x3   :  { %21 = vmax.xlane.f32.xlu0 %v20_v1  ;;  %86 = vset.pattern.permute.xlu1 %v106_v3  ;;  %s71_s13 = sshll.u32 %s138_s2, 4  ;;  %s107_s16 = smov [#allocation2]   ;;  %s72_s13 = int_to_ptr.hbm [resolvable:$true] %s71_s13 }
   0x4   :  { %87 = vset.pattern.permute.xlu0 %v106_v3  ;;  %36 = vperm.xlu1 %86, %v32_v2   ;;  %v34_v11 = vand.u32 127, %v33_v10 }
  0x76   :  { %v22_v4 = vpop.xlane.xlu0 %21  ;;  %v37_v12 = vpop.permute.xlu1 %36 }
  0x77   :  { %v23_v5 = vsub.f32 %v18_v0, %v22_v4  ;;  %vm38_vm1 = vcmp.eq.s32.totalorder %v34_v11, %v37_v12 }
  0x79   :  { %v24_v6 = vmul.f32 1.442695, %v23_v5 }
  0x7b   :  { %88 = vpow2.f32 %v24_v6 }
  0x81   :  { %v89_v7 = vpop.eup %88 }
  0x82   :  { %v26_v8 = vsel %vm19_vm0, %v89_v7, 0.0 }
  0x83   :  { %27 = vadd.xlane.f32.xlu0 %v26_v8 }
  0xf6   :  { %v28_v9 = vpop.xlane.xlu0 %27 }
  0xf7   :  { %90 = vlog2.f32 %v28_v9 }
  0xfd   :  { %v91_v13 = vpop.eup %90 }
  0xfe   :  { %v30_v14 = vmul.f32 0.6931472, %v91_v13 }
 0x100   :  { %v31_v15 = vsub.f32 %v23_v5, %v30_v14 }
 0x102   :  { %v39_v16 = vsel %vm19_vm0, %v31_v15, 0.0  ;;  %v42_v17 = vsel %vm38_vm1, %v31_v15, 0.0 }
 0x103   :  { %40 = vadd.xlane.f32.xlu1 %v39_v16  ;;  %v43_v18 = vsel %vm19_vm0, %v42_v17, 0.0 }
 0x104   :  { %44 = vadd.xlane.f32.xlu2 %v43_v18 }
 0x176   :  { %v41_v19 = vpop.xlane.xlu1 %40 }
 0x177   :  { %v46_v20 = vmul.f32 0.0032258064, %v41_v19  ;;  %v45_v21 = vpop.xlane.xlu2 %44 }
 0x178   :  { %v47_v22 = vmul.f32 0.8967742, %v45_v21 }
 0x17a   :  { %v48_v23 = vadd.f32 %v47_v22, %v46_v20 }
 0x17c   :  { %v49_v24 = vsub.f32 0.0, %v48_v23 }
 0x17e   :  { %v52_v25 = vsel %vm51_vm2, %v49_v24, 0.0 }
 0x17f   :  { %53 = vadd.xlane.f32.xlu2 %v52_v25 }
 0x1f2   :  { %v54_v26 = vpop.xlane.xlu2 %53 }
 0x1f3   :  { %v55_v27 = vrot.slane %v54_v26, 4 }
 0x1f5   :  { %v56_v28 = vadd.f32 %v55_v27, %v54_v26 }
 0x1f7   :  { %v57_v29 = vrot.slane %v56_v28, 2 }
 0x1f9   :  { %v58_v30 = vadd.f32 %v57_v29, %v56_v28 }
 0x1fb   :  { %v59_v31 = vrot.slane %v58_v30, 1 }
 0x1fd   :  { %v60_v32 = vadd.f32 %v59_v31, %v58_v30 }
 0x1ff   :  { %81 = vpush %v60_v32 }
 0x230   :  { %s82_s14 = spop %81 }
 0x231   :  { %s62_s15 = smul.f32 0.125, %s82_s14 }
 0x233   :  { %65 = sst [smem:[#allocation2]] %s62_s15 }
 0x234   :  { %74 = dma.smem_to_hbm %s107_s16, 16, %s72_s13, [#allocation3]  }
 0x235   :  { %104 = dma.done.wait [#allocation3], 16  }
 0x236   :  { %105 = vsyncadd [#allocation3], 4294967280 }
 0x237   :  { %79 = sfence }
 0x238   :  { %80 = vsyncpa [#allocation3], 1 }

</bundles_post_ra>
